<compile_context>
chip_gen: v7x
topology: tpu7x:2x2x1
jax: 0.10.0
libtpu: 0.0.40
codegen_flags: <defaults>
</compile_context>

<pallas_src>
import jax
import jax.numpy as jnp
from jax.experimental import pallas as pl
from jax.experimental.pallas import tpu as pltpu


def _round_up(x, m):
    return ((x + m - 1) // m) * m


def _char_decoder_kernel(x_ref, wih_ref, whh_ref, b_ref, wout_ref, bout_ref,
                         h0_ref, c0_ref,
                         scores_ref, hout_ref, cout_ref,
                         xz_sc, hs_sc):
    Bp, H = h0_ref.shape
    LBp = xz_sc.shape[0]
    L = LBp // Bp

    # ---- batched input-gate contribution for ALL timesteps (one MXU matmul) ----
    # xz[t*Bp:(t+1)*Bp] = X_t @ W_ih^T + (b_ih + b_hh), gates stacked i,f,g,o.
    xz_sc[...] = (jnp.dot(x_ref[...], wih_ref[...],
                          preferred_element_type=jnp.float32)
                  + b_ref[...])

    whh = whh_ref[...]                      # (H, 4H) bf16, hoisted out of loop

    def step(t, carry):
        h, c = carry                        # f32 (Bp, H)
        r0 = pl.multiple_of(t * Bp, Bp)     # sublane-aligned row offset
        xz_t = xz_sc[pl.ds(r0, Bp), :]      # (Bp, 4H) f32
        gates = xz_t + jnp.dot(h.astype(jnp.bfloat16), whh,
                               preferred_element_type=jnp.float32)
        i_g = jax.nn.sigmoid(gates[:, 0 * H:1 * H])
        f_g = jax.nn.sigmoid(gates[:, 1 * H:2 * H])
        g_g = jnp.tanh(gates[:, 2 * H:3 * H])
        o_g = jax.nn.sigmoid(gates[:, 3 * H:4 * H])
        c_new = f_g * c + i_g * g_g
        h_new = o_g * jnp.tanh(c_new)
        hs_sc[pl.ds(r0, Bp), :] = h_new     # accumulate hidden states for the
        return h_new, c_new                 # batched projection below

    h_fin, c_fin = jax.lax.fori_loop(0, L, step, (h0_ref[...], c0_ref[...]),
                                     unroll=True)

    hout_ref[...] = h_fin
    cout_ref[...] = c_fin

    # ---- batched output projection: one matmul + one lane-dense store ----
    scores_ref[...] = (jnp.dot(hs_sc[...].astype(jnp.bfloat16), wout_ref[...],
                               preferred_element_type=jnp.float32)
                       + bout_ref[...])


@jax.jit
def char_decoder_forward(input_ids, emb_table, w_ih, w_hh, b_ih, b_hh,
                         w_out, b_out, h0, c0):
    """CharDecoder.forward.

    input_ids : (L, B) int32 character ids
    emb_table : (V, E) f32   (padding_idx row is zero)
    w_ih      : (4H, E) f32  nn.LSTM weight_ih_l0 (PyTorch gate order i,f,g,o)
    w_hh      : (4H, H) f32  nn.LSTM weight_hh_l0
    b_ih,b_hh : (4H,)   f32
    w_out     : (V, H)  f32  char_output_projection.weight
    b_out     : (V,)    f32
    h0, c0    : (1, B, H) f32
    Returns scores (L, B, V) f32 and (h_n, c_n), each (1, B, H) f32.
    """
    L, B = input_ids.shape
    V, E = emb_table.shape
    H = h0.shape[-1]

    Bp = max(8, _round_up(B, 8))     # sublane-aligned batch
    Vp = _round_up(V, 128)           # lane-dense scores

    # TODO(synk): fold the embedding gather into the kernel via scalar-prefetched
    # ids; kept as XLA glue since in-kernel gather lowering is limited.
    X = jnp.take(emb_table, input_ids, axis=0)                  # (L, B, E) f32
    X = jnp.pad(X, ((0, 0), (0, Bp - B), (0, 0)))               # (L, Bp, E)
    X = X.reshape(L * Bp, E).astype(jnp.bfloat16)

    wih_k = w_ih.T.astype(jnp.bfloat16)                         # (E, 4H)
    whh_k = w_hh.T.astype(jnp.bfloat16)                         # (H, 4H)
    b_k = (b_ih + b_hh)[None, :].astype(jnp.float32)            # (1, 4H)
    wout_k = jnp.pad(w_out.T, ((0, 0), (0, Vp - V))).astype(jnp.bfloat16)  # (H,Vp)
    bout_k = jnp.pad(b_out, (0, Vp - V))[None, :].astype(jnp.float32)      # (1,Vp)

    h0_k = jnp.pad(h0[0], ((0, Bp - B), (0, 0)))                # (Bp, H)
    c0_k = jnp.pad(c0[0], ((0, Bp - B), (0, 0)))                # (Bp, H)

    grid_spec = pltpu.PrefetchScalarGridSpec(
        num_scalar_prefetch=0,
        grid=(1,),
        in_specs=[
            pl.BlockSpec((L * Bp, E), lambda i: (0, 0)),        # X (flattened)
            pl.BlockSpec((E, 4 * H), lambda i: (0, 0)),         # W_ih^T
            pl.BlockSpec((H, 4 * H), lambda i: (0, 0)),         # W_hh^T
            pl.BlockSpec((1, 4 * H), lambda i: (0, 0)),         # b_ih + b_hh
            pl.BlockSpec((H, Vp), lambda i: (0, 0)),            # W_out^T (padded)
            pl.BlockSpec((1, Vp), lambda i: (0, 0)),            # b_out (padded)
            pl.BlockSpec((Bp, H), lambda i: (0, 0)),            # h0
            pl.BlockSpec((Bp, H), lambda i: (0, 0)),            # c0
        ],
        out_specs=[
            pl.BlockSpec((L * Bp, Vp), lambda i: (0, 0)),       # scores (padded)
            pl.BlockSpec((Bp, H), lambda i: (0, 0)),            # h final
            pl.BlockSpec((Bp, H), lambda i: (0, 0)),            # c final
        ],
        scratch_shapes=[
            pltpu.VMEM((L * Bp, 4 * H), jnp.float32),   # xz: x @ W_ih + b, all steps
            pltpu.VMEM((L * Bp, H), jnp.float32),       # hs: all hidden states
        ],
    )

    scores_p, h_n, c_n = pl.pallas_call(
        _char_decoder_kernel,
        out_shape=(
            jax.ShapeDtypeStruct((L * Bp, Vp), jnp.float32),
            jax.ShapeDtypeStruct((Bp, H), jnp.float32),
            jax.ShapeDtypeStruct((Bp, H), jnp.float32),
        ),
        grid_spec=grid_spec,
        compiler_params=pltpu.CompilerParams(
            dimension_semantics=("arbitrary",)),
    )(X, wih_k, whh_k, b_k, wout_k, bout_k, h0_k, c0_k)

    scores = scores_p.reshape(L, Bp, Vp)[:, :B, :V]
    return scores, (h_n[None, :B, :], c_n[None, :B, :])


def _reference_forward(input_ids, emb_table, w_ih, w_hh, b_ih, b_hh,
                       w_out, b_out, h0, c0):
    """Pure-JAX reference with the same bf16-operand / f32-accumulate matmuls."""
    H = h0.shape[-1]
    X = jnp.take(emb_table, input_ids, axis=0)                  # (L, B, E)
    wih_t = w_ih.T.astype(jnp.bfloat16)
    whh_t = w_hh.T.astype(jnp.bfloat16)
    bias = (b_ih + b_hh)[None, :]
    wout_t = w_out.T.astype(jnp.bfloat16)

    def step(carry, x_t):
        h, c = carry
        gates = (jnp.dot(x_t.astype(jnp.bfloat16), wih_t,
                         preferred_element_type=jnp.float32)
                 + jnp.dot(h.astype(jnp.bfloat16), whh_t,
                           preferred_element_type=jnp.float32)
                 + bias)
        i_g = jax.nn.sigmoid(gates[:, 0 * H:1 * H])
        f_g = jax.nn.sigmoid(gates[:, 1 * H:2 * H])
        g_g = jnp.tanh(gates[:, 2 * H:3 * H])
        o_g = jax.nn.sigmoid(gates[:, 3 * H:4 * H])
        c_n = f_g * c + i_g * g_g
        h_n = o_g * jnp.tanh(c_n)
        s = (jnp.dot(h_n.astype(jnp.bfloat16), wout_t,
                     preferred_element_type=jnp.float32) + b_out[None, :])
        return (h_n, c_n), s

    (h, c), scores = jax.lax.scan(step, (h0[0], c0[0]), X)
    return scores, (h[None], c[None])


if __name__ == "__main__":
    # Small deterministic shapes consistent with CharDecoder.forward.
    L, B = 8, 4            # (length, batch)
    E = 50                 # char_embedding_size
    H = 32                 # hidden_size
    V = 30                 # vocab_size (len(target_vocab.char2id))
    PAD_IDX = 0            # target_vocab.char2id['<pad>']

    key = jax.random.PRNGKey(0)
    ks = jax.random.split(key, 10)
    scale = 1.0 / jnp.sqrt(H)

    # PyTorch-layout parameters (nn.LSTM / nn.Linear / nn.Embedding).
    w_ih = jax.random.uniform(ks[0], (4 * H, E), jnp.float32, -scale, scale)
    w_hh = jax.random.uniform(ks[1], (4 * H, H), jnp.float32, -scale, scale)
    b_ih = jax.random.uniform(ks[2], (4 * H,), jnp.float32, -scale, scale)
    b_hh = jax.random.uniform(ks[3], (4 * H,), jnp.float32, -scale, scale)
    w_out = jax.random.uniform(ks[4], (V, H), jnp.float32, -scale, scale)
    b_out = jax.random.uniform(ks[5], (V,), jnp.float32, -scale, scale)
    emb_table = jax.random.normal(ks[6], (V, E), jnp.float32)
    emb_table = emb_table.at[PAD_IDX].set(0.0)   # padding_idx row = 0

    input_ids = jax.random.randint(ks[7], (L, B), 0, V, dtype=jnp.int32)
    h0 = jax.random.normal(ks[8], (1, B, H), jnp.float32)
    c0 = jax.random.normal(ks[9], (1, B, H), jnp.float32)

    scores, (h_n, c_n) = char_decoder_forward(
        input_ids, emb_table, w_ih, w_hh, b_ih, b_hh, w_out, b_out, h0, c0)
    jax.block_until_ready((scores, h_n, c_n))

    ref_scores, (ref_h, ref_c) = _reference_forward(
        input_ids, emb_table, w_ih, w_hh, b_ih, b_hh, w_out, b_out, h0, c0)

    assert scores.shape == (L, B, V)
    assert h_n.shape == (1, B, H) and c_n.shape == (1, B, H)
    # bf16 MXU operands -> compare against a bf16-emulating reference.
    # (Vs a pure-f32 PyTorch reference the expected deviation is ~1e-2 rel.)
    assert jnp.allclose(scores, ref_scores, atol=2e-3, rtol=2e-3)
    assert jnp.allclose(h_n, ref_h, atol=2e-3, rtol=2e-3)
    assert jnp.allclose(c_n, ref_c, atol=2e-3, rtol=2e-3)

    print("KERNEL_OK")
</pallas_src>

<mosaic_0001>
module attributes {stable_mosaic.version = 11 : i64} {
  func.func @_char_decoder_kernel(%arg0: i32, %arg1: memref<64x50xbf16, #tpu.memory_space<vmem>>, %arg2: memref<50x128xbf16, #tpu.memory_space<vmem>>, %arg3: memref<32x128xbf16, #tpu.memory_space<vmem>>, %arg4: memref<1x128xf32, #tpu.memory_space<vmem>>, %arg5: memref<32x128xbf16, #tpu.memory_space<vmem>>, %arg6: memref<1x128xf32, #tpu.memory_space<vmem>>, %arg7: memref<8x32xf32, #tpu.memory_space<vmem>>, %arg8: memref<8x32xf32, #tpu.memory_space<vmem>>, %arg9: memref<64x128xf32, #tpu.memory_space<vmem>>, %arg10: memref<8x32xf32, #tpu.memory_space<vmem>>, %arg11: memref<8x32xf32, #tpu.memory_space<vmem>>, %arg12: memref<64x128xf32, #tpu.memory_space<vmem>>, %arg13: memref<64x32xf32, #tpu.memory_space<vmem>>) attributes {dimension_semantics = [#tpu.dimension_semantics<arbitrary>], iteration_bounds = array<i64: 1>, scalar_prefetch = 0 : i64, scratch_operands = 2 : i64, tpu.core_type = #tpu.core_type<tc>, window_params = [{pipeline_mode = #tpu.pipeline_mode<synchronous>, transform_indices = @transform_0, window_bounds = array<i64: 64, 50>}, {pipeline_mode = #tpu.pipeline_mode<synchronous>, transform_indices = @transform_1, window_bounds = array<i64: 50, 128>}, {pipeline_mode = #tpu.pipeline_mode<synchronous>, transform_indices = @transform_2, window_bounds = array<i64: 32, 128>}, {pipeline_mode = #tpu.pipeline_mode<synchronous>, transform_indices = @transform_3, window_bounds = array<i64: 1, 128>}, {pipeline_mode = #tpu.pipeline_mode<synchronous>, transform_indices = @transform_4, window_bounds = array<i64: 32, 128>}, {pipeline_mode = #tpu.pipeline_mode<synchronous>, transform_indices = @transform_5, window_bounds = array<i64: 1, 128>}, {pipeline_mode = #tpu.pipeline_mode<synchronous>, transform_indices = @transform_6, window_bounds = array<i64: 8, 32>}, {pipeline_mode = #tpu.pipeline_mode<synchronous>, transform_indices = @transform_7, window_bounds = array<i64: 8, 32>}, {pipeline_mode = #tpu.pipeline_mode<synchronous>, transform_indices = @transform_8, window_bounds = array<i64: 64, 128>}, {pipeline_mode = #tpu.pipeline_mode<synchronous>, transform_indices = @transform_9, window_bounds = array<i64: 8, 32>}, {pipeline_mode = #tpu.pipeline_mode<synchronous>, transform_indices = @transform_10, window_bounds = array<i64: 8, 32>}]} {
    %c0 = arith.constant 0 : index
    %c0_0 = arith.constant 0 : index
    %0 = vector.load %arg1[%c0, %c0_0] : memref<64x50xbf16, #tpu.memory_space<vmem>>, vector<64x50xbf16>
    %c0_1 = arith.constant 0 : index
    %c0_2 = arith.constant 0 : index
    %1 = vector.load %arg2[%c0_1, %c0_2] : memref<50x128xbf16, #tpu.memory_space<vmem>>, vector<50x128xbf16>
    %cst = arith.constant dense<0.000000e+00> : vector<64x128xf32>
    %2 = tpu.matmul %0, %1, %cst {dimension_numbers = #tpu.dot_dimension_numbers<[1], [0], [0], [1], [0, 0, 1, 1], [], []>} : vector<64x50xbf16>, vector<50x128xbf16>, vector<64x128xf32> -> vector<64x128xf32>
    %c0_3 = arith.constant 0 : index
    %c0_4 = arith.constant 0 : index
    %3 = vector.load %arg4[%c0_3, %c0_4] : memref<1x128xf32, #tpu.memory_space<vmem>>, vector<1x128xf32>
    %4 = vector.broadcast %3 : vector<1x128xf32> to vector<64x128xf32>
    %5 = arith.addf %2, %4 : vector<64x128xf32>
    %c0_5 = arith.constant 0 : index
    %c0_6 = arith.constant 0 : index
    %6 = vector.load %arg12[%c0_5, %c0_6] : memref<64x128xf32, #tpu.memory_space<vmem>>, vector<64x128xf32>
    tpu.vector_store %arg12[%c0_5, %c0_6], %5 {strides = array<i32>} : memref<64x128xf32, #tpu.memory_space<vmem>>, vector<64x128xf32>,
    %c0_7 = arith.constant 0 : index
    %c0_8 = arith.constant 0 : index
    %7 = vector.load %arg3[%c0_7, %c0_8] : memref<32x128xbf16, #tpu.memory_space<vmem>>, vector<32x128xbf16>
    %c0_9 = arith.constant 0 : index
    %c0_10 = arith.constant 0 : index
    %8 = vector.load %arg7[%c0_9, %c0_10] : memref<8x32xf32, #tpu.memory_space<vmem>>, vector<8x32xf32>
    %c0_11 = arith.constant 0 : index
    %c0_12 = arith.constant 0 : index
    %9 = vector.load %arg8[%c0_11, %c0_12] : memref<8x32xf32, #tpu.memory_space<vmem>>, vector<8x32xf32>
    %c0_i32 = arith.constant 0 : i32
    %c8_i32 = arith.constant 8 : i32
    %10 = arith.muli %c0_i32, %c8_i32 : i32
    %11 = tpu.assume_multiple %10, 8 : i32
    %12 = arith.index_cast %11 : i32 to index
    %c0_13 = arith.constant 0 : index
    %13 = vector.load %arg12[%12, %c0_13] : memref<64x128xf32, #tpu.memory_space<vmem>>, vector<8x128xf32>
    %14 = arith.truncf %8 : vector<8x32xf32> to vector<8x32xbf16>
    %cst_14 = arith.constant dense<0.000000e+00> : vector<8x128xf32>
    %15 = tpu.matmul %14, %7, %cst_14 {dimension_numbers = #tpu.dot_dimension_numbers<[1], [0], [0], [1], [0, 0, 1, 1], [], []>} : vector<8x32xbf16>, vector<32x128xbf16>, vector<8x128xf32> -> vector<8x128xf32>
    %16 = arith.addf %13, %15 : vector<8x128xf32>
    %17 = vector.extract_strided_slice %16 {offsets = [0, 0], sizes = [8, 32], strides = [1, 1]} : vector<8x128xf32> to vector<8x32xf32>
    %18 = arith.negf %17 : vector<8x32xf32>
    %19 = math.exp %18 : vector<8x32xf32>
    %cst_15 = arith.constant 1.000000e+00 : f32
    %20 = vector.broadcast %cst_15 : f32 to vector<8x32xf32>
    %21 = arith.addf %20, %19 : vector<8x32xf32>
    %22 = arith.divf %20, %21 : vector<8x32xf32>
    %23 = vector.extract_strided_slice %16 {offsets = [0, 32], sizes = [8, 32], strides = [1, 1]} : vector<8x128xf32> to vector<8x32xf32>
    %24 = arith.negf %23 : vector<8x32xf32>
    %25 = math.exp %24 : vector<8x32xf32>
    %cst_16 = arith.constant 1.000000e+00 : f32
    %26 = vector.broadcast %cst_16 : f32 to vector<8x32xf32>
    %27 = arith.addf %26, %25 : vector<8x32xf32>
    %28 = arith.divf %26, %27 : vector<8x32xf32>
    %29 = vector.extract_strided_slice %16 {offsets = [0, 64], sizes = [8, 32], strides = [1, 1]} : vector<8x128xf32> to vector<8x32xf32>
    %30 = math.tanh %29 : vector<8x32xf32>
    %31 = vector.extract_strided_slice %16 {offsets = [0, 96], sizes = [8, 32], strides = [1, 1]} : vector<8x128xf32> to vector<8x32xf32>
    %32 = arith.negf %31 : vector<8x32xf32>
    %33 = math.exp %32 : vector<8x32xf32>
    %cst_17 = arith.constant 1.000000e+00 : f32
    %34 = vector.broadcast %cst_17 : f32 to vector<8x32xf32>
    %35 = arith.addf %34, %33 : vector<8x32xf32>
    %36 = arith.divf %34, %35 : vector<8x32xf32>
    %37 = arith.mulf %28, %9 : vector<8x32xf32>
    %38 = arith.mulf %22, %30 : vector<8x32xf32>
    %39 = arith.addf %37, %38 : vector<8x32xf32>
    %40 = math.tanh %39 : vector<8x32xf32>
    %41 = arith.mulf %36, %40 : vector<8x32xf32>
    %42 = arith.index_cast %11 : i32 to index
    %c0_18 = arith.constant 0 : index
    %43 = vector.load %arg13[%42, %c0_18] : memref<64x32xf32, #tpu.memory_space<vmem>>, vector<8x32xf32>
    tpu.vector_store %arg13[%42, %c0_18], %41 {strides = array<i32>} : memref<64x32xf32, #tpu.memory_space<vmem>>, vector<8x32xf32>,
    %c1_i32 = arith.constant 1 : i32
    %c8_i32_19 = arith.constant 8 : i32
    %44 = arith.muli %c1_i32, %c8_i32_19 : i32
    %45 = tpu.assume_multiple %44, 8 : i32
    %46 = arith.index_cast %45 : i32 to index
    %c0_20 = arith.constant 0 : index
    %47 = vector.load %arg12[%46, %c0_20] : memref<64x128xf32, #tpu.memory_space<vmem>>, vector<8x128xf32>
    %48 = arith.truncf %41 : vector<8x32xf32> to vector<8x32xbf16>
    %cst_21 = arith.constant dense<0.000000e+00> : vector<8x128xf32>
    %49 = tpu.matmul %48, %7, %cst_21 {dimension_numbers = #tpu.dot_dimension_numbers<[1], [0], [0], [1], [0, 0, 1, 1], [], []>} : vector<8x32xbf16>, vector<32x128xbf16>, vector<8x128xf32> -> vector<8x128xf32>
    %50 = arith.addf %47, %49 : vector<8x128xf32>
    %51 = vector.extract_strided_slice %50 {offsets = [0, 0], sizes = [8, 32], strides = [1, 1]} : vector<8x128xf32> to vector<8x32xf32>
    %52 = arith.negf %51 : vector<8x32xf32>
    %53 = math.exp %52 : vector<8x32xf32>
    %cst_22 = arith.constant 1.000000e+00 : f32
    %54 = vector.broadcast %cst_22 : f32 to vector<8x32xf32>
    %55 = arith.addf %54, %53 : vector<8x32xf32>
    %56 = arith.divf %54, %55 : vector<8x32xf32>
    %57 = vector.extract_strided_slice %50 {offsets = [0, 32], sizes = [8, 32], strides = [1, 1]} : vector<8x128xf32> to vector<8x32xf32>
    %58 = arith.negf %57 : vector<8x32xf32>
    %59 = math.exp %58 : vector<8x32xf32>
    %cst_23 = arith.constant 1.000000e+00 : f32
    %60 = vector.broadcast %cst_23 : f32 to vector<8x32xf32>
    %61 = arith.addf %60, %59 : vector<8x32xf32>
    %62 = arith.divf %60, %61 : vector<8x32xf32>
    %63 = vector.extract_strided_slice %50 {offsets = [0, 64], sizes = [8, 32], strides = [1, 1]} : vector<8x128xf32> to vector<8x32xf32>
    %64 = math.tanh %63 : vector<8x32xf32>
    %65 = vector.extract_strided_slice %50 {offsets = [0, 96], sizes = [8, 32], strides = [1, 1]} : vector<8x128xf32> to vector<8x32xf32>
    %66 = arith.negf %65 : vector<8x32xf32>
    %67 = math.exp %66 : vector<8x32xf32>
    %cst_24 = arith.constant 1.000000e+00 : f32
    %68 = vector.broadcast %cst_24 : f32 to vector<8x32xf32>
    %69 = arith.addf %68, %67 : vector<8x32xf32>
    %70 = arith.divf %68, %69 : vector<8x32xf32>
    %71 = arith.mulf %62, %39 : vector<8x32xf32>
    %72 = arith.mulf %56, %64 : vector<8x32xf32>
    %73 = arith.addf %71, %72 : vector<8x32xf32>
    %74 = math.tanh %73 : vector<8x32xf32>
    %75 = arith.mulf %70, %74 : vector<8x32xf32>
    %76 = arith.index_cast %45 : i32 to index
    %c0_25 = arith.constant 0 : index
    %77 = vector.load %arg13[%76, %c0_25] : memref<64x32xf32, #tpu.memory_space<vmem>>, vector<8x32xf32>
    tpu.vector_store %arg13[%76, %c0_25], %75 {strides = array<i32>} : memref<64x32xf32, #tpu.memory_space<vmem>>, vector<8x32xf32>,
    %c2_i32 = arith.constant 2 : i32
    %c8_i32_26 = arith.constant 8 : i32
    %78 = arith.muli %c2_i32, %c8_i32_26 : i32
    %79 = tpu.assume_multiple %78, 8 : i32
    %80 = arith.index_cast %79 : i32 to index
    %c0_27 = arith.constant 0 : index
    %81 = vector.load %arg12[%80, %c0_27] : memref<64x128xf32, #tpu.memory_space<vmem>>, vector<8x128xf32>
    %82 = arith.truncf %75 : vector<8x32xf32> to vector<8x32xbf16>
    %cst_28 = arith.constant dense<0.000000e+00> : vector<8x128xf32>
    %83 = tpu.matmul %82, %7, %cst_28 {dimension_numbers = #tpu.dot_dimension_numbers<[1], [0], [0], [1], [0, 0, 1, 1], [], []>} : vector<8x32xbf16>, vector<32x128xbf16>, vector<8x128xf32> -> vector<8x128xf32>
    %84 = arith.addf %81, %83 : vector<8x128xf32>
    %85 = vector.extract_strided_slice %84 {offsets = [0, 0], sizes = [8, 32], strides = [1, 1]} : vector<8x128xf32> to vector<8x32xf32>
    %86 = arith.negf %85 : vector<8x32xf32>
    %87 = math.exp %86 : vector<8x32xf32>
    %cst_29 = arith.constant 1.000000e+00 : f32
    %88 = vector.broadcast %cst_29 : f32 to vector<8x32xf32>
    %89 = arith.addf %88, %87 : vector<8x32xf32>
    %90 = arith.divf %88, %89 : vector<8x32xf32>
    %91 = vector.extract_strided_slice %84 {offsets = [0, 32], sizes = [8, 32], strides = [1, 1]} : vector<8x128xf32> to vector<8x32xf32>
    %92 = arith.negf %91 : vector<8x32xf32>
    %93 = math.exp %92 : vector<8x32xf32>
    %cst_30 = arith.constant 1.000000e+00 : f32
    %94 = vector.broadcast %cst_30 : f32 to vector<8x32xf32>
    %95 = arith.addf %94, %93 : vector<8x32xf32>
    %96 = arith.divf %94, %95 : vector<8x32xf32>
    %97 = vector.extract_strided_slice %84 {offsets = [0, 64], sizes = [8, 32], strides = [1, 1]} : vector<8x128xf32> to vector<8x32xf32>
    %98 = math.tanh %97 : vector<8x32xf32>
    %99 = vector.extract_strided_slice %84 {offsets = [0, 96], sizes = [8, 32], strides = [1, 1]} : vector<8x128xf32> to vector<8x32xf32>
    %100 = arith.negf %99 : vector<8x32xf32>
    %101 = math.exp %100 : vector<8x32xf32>
    %cst_31 = arith.constant 1.000000e+00 : f32
    %102 = vector.broadcast %cst_31 : f32 to vector<8x32xf32>
    %103 = arith.addf %102, %101 : vector<8x32xf32>
    %104 = arith.divf %102, %103 : vector<8x32xf32>
    %105 = arith.mulf %96, %73 : vector<8x32xf32>
    %106 = arith.mulf %90, %98 : vector<8x32xf32>
    %107 = arith.addf %105, %106 : vector<8x32xf32>
    %108 = math.tanh %107 : vector<8x32xf32>
    %109 = arith.mulf %104, %108 : vector<8x32xf32>
    %110 = arith.index_cast %79 : i32 to index
    %c0_32 = arith.constant 0 : index
    %111 = vector.load %arg13[%110, %c0_32] : memref<64x32xf32, #tpu.memory_space<vmem>>, vector<8x32xf32>
    tpu.vector_store %arg13[%110, %c0_32], %109 {strides = array<i32>} : memref<64x32xf32, #tpu.memory_space<vmem>>, vector<8x32xf32>,
    %c3_i32 = arith.constant 3 : i32
    %c8_i32_33 = arith.constant 8 : i32
    %112 = arith.muli %c3_i32, %c8_i32_33 : i32
    %113 = tpu.assume_multiple %112, 8 : i32
    %114 = arith.index_cast %113 : i32 to index
    %c0_34 = arith.constant 0 : index
    %115 = vector.load %arg12[%114, %c0_34] : memref<64x128xf32, #tpu.memory_space<vmem>>, vector<8x128xf32>
    %116 = arith.truncf %109 : vector<8x32xf32> to vector<8x32xbf16>
    %cst_35 = arith.constant dense<0.000000e+00> : vector<8x128xf32>
    %117 = tpu.matmul %116, %7, %cst_35 {dimension_numbers = #tpu.dot_dimension_numbers<[1], [0], [0], [1], [0, 0, 1, 1], [], []>} : vector<8x32xbf16>, vector<32x128xbf16>, vector<8x128xf32> -> vector<8x128xf32>
    %118 = arith.addf %115, %117 : vector<8x128xf32>
    %119 = vector.extract_strided_slice %118 {offsets = [0, 0], sizes = [8, 32], strides = [1, 1]} : vector<8x128xf32> to vector<8x32xf32>
    %120 = arith.negf %119 : vector<8x32xf32>
    %121 = math.exp %120 : vector<8x32xf32>
    %cst_36 = arith.constant 1.000000e+00 : f32
    %122 = vector.broadcast %cst_36 : f32 to vector<8x32xf32>
    %123 = arith.addf %122, %121 : vector<8x32xf32>
    %124 = arith.divf %122, %123 : vector<8x32xf32>
    %125 = vector.extract_strided_slice %118 {offsets = [0, 32], sizes = [8, 32], strides = [1, 1]} : vector<8x128xf32> to vector<8x32xf32>
    %126 = arith.negf %125 : vector<8x32xf32>
    %127 = math.exp %126 : vector<8x32xf32>
    %cst_37 = arith.constant 1.000000e+00 : f32
    %128 = vector.broadcast %cst_37 : f32 to vector<8x32xf32>
    %129 = arith.addf %128, %127 : vector<8x32xf32>
    %130 = arith.divf %128, %129 : vector<8x32xf32>
    %131 = vector.extract_strided_slice %118 {offsets = [0, 64], sizes = [8, 32], strides = [1, 1]} : vector<8x128xf32> to vector<8x32xf32>
    %132 = math.tanh %131 : vector<8x32xf32>
    %133 = vector.extract_strided_slice %118 {offsets = [0, 96], sizes = [8, 32], strides = [1, 1]} : vector<8x128xf32> to vector<8x32xf32>
    %134 = arith.negf %133 : vector<8x32xf32>
    %135 = math.exp %134 : vector<8x32xf32>
    %cst_38 = arith.constant 1.000000e+00 : f32
    %136 = vector.broadcast %cst_38 : f32 to vector<8x32xf32>
    %137 = arith.addf %136, %135 : vector<8x32xf32>
    %138 = arith.divf %136, %137 : vector<8x32xf32>
    %139 = arith.mulf %130, %107 : vector<8x32xf32>
    %140 = arith.mulf %124, %132 : vector<8x32xf32>
    %141 = arith.addf %139, %140 : vector<8x32xf32>
    %142 = math.tanh %141 : vector<8x32xf32>
    %143 = arith.mulf %138, %142 : vector<8x32xf32>
    %144 = arith.index_cast %113 : i32 to index
    %c0_39 = arith.constant 0 : index
    %145 = vector.load %arg13[%144, %c0_39] : memref<64x32xf32, #tpu.memory_space<vmem>>, vector<8x32xf32>
    tpu.vector_store %arg13[%144, %c0_39], %143 {strides = array<i32>} : memref<64x32xf32, #tpu.memory_space<vmem>>, vector<8x32xf32>,
    %c4_i32 = arith.constant 4 : i32
    %c8_i32_40 = arith.constant 8 : i32
    %146 = arith.muli %c4_i32, %c8_i32_40 : i32
    %147 = tpu.assume_multiple %146, 8 : i32
    %148 = arith.index_cast %147 : i32 to index
    %c0_41 = arith.constant 0 : index
    %149 = vector.load %arg12[%148, %c0_41] : memref<64x128xf32, #tpu.memory_space<vmem>>, vector<8x128xf32>
    %150 = arith.truncf %143 : vector<8x32xf32> to vector<8x32xbf16>
    %cst_42 = arith.constant dense<0.000000e+00> : vector<8x128xf32>
    %151 = tpu.matmul %150, %7, %cst_42 {dimension_numbers = #tpu.dot_dimension_numbers<[1], [0], [0], [1], [0, 0, 1, 1], [], []>} : vector<8x32xbf16>, vector<32x128xbf16>, vector<8x128xf32> -> vector<8x128xf32>
    %152 = arith.addf %149, %151 : vector<8x128xf32>
    %153 = vector.extract_strided_slice %152 {offsets = [0, 0], sizes = [8, 32], strides = [1, 1]} : vector<8x128xf32> to vector<8x32xf32>
    %154 = arith.negf %153 : vector<8x32xf32>
    %155 = math.exp %154 : vector<8x32xf32>
    %cst_43 = arith.constant 1.000000e+00 : f32
    %156 = vector.broadcast %cst_43 : f32 to vector<8x32xf32>
    %157 = arith.addf %156, %155 : vector<8x32xf32>
    %158 = arith.divf %156, %157 : vector<8x32xf32>
    %159 = vector.extract_strided_slice %152 {offsets = [0, 32], sizes = [8, 32], strides = [1, 1]} : vector<8x128xf32> to vector<8x32xf32>
    %160 = arith.negf %159 : vector<8x32xf32>
    %161 = math.exp %160 : vector<8x32xf32>
    %cst_44 = arith.constant 1.000000e+00 : f32
    %162 = vector.broadcast %cst_44 : f32 to vector<8x32xf32>
    %163 = arith.addf %162, %161 : vector<8x32xf32>
    %164 = arith.divf %162, %163 : vector<8x32xf32>
    %165 = vector.extract_strided_slice %152 {offsets = [0, 64], sizes = [8, 32], strides = [1, 1]} : vector<8x128xf32> to vector<8x32xf32>
    %166 = math.tanh %165 : vector<8x32xf32>
    %167 = vector.extract_strided_slice %152 {offsets = [0, 96], sizes = [8, 32], strides = [1, 1]} : vector<8x128xf32> to vector<8x32xf32>
    %168 = arith.negf %167 : vector<8x32xf32>
    %169 = math.exp %168 : vector<8x32xf32>
    %cst_45 = arith.constant 1.000000e+00 : f32
    %170 = vector.broadcast %cst_45 : f32 to vector<8x32xf32>
    %171 = arith.addf %170, %169 : vector<8x32xf32>
    %172 = arith.divf %170, %171 : vector<8x32xf32>
    %173 = arith.mulf %164, %141 : vector<8x32xf32>
    %174 = arith.mulf %158, %166 : vector<8x32xf32>
    %175 = arith.addf %173, %174 : vector<8x32xf32>
    %176 = math.tanh %175 : vector<8x32xf32>
    %177 = arith.mulf %172, %176 : vector<8x32xf32>
    %178 = arith.index_cast %147 : i32 to index
    %c0_46 = arith.constant 0 : index
    %179 = vector.load %arg13[%178, %c0_46] : memref<64x32xf32, #tpu.memory_space<vmem>>, vector<8x32xf32>
    tpu.vector_store %arg13[%178, %c0_46], %177 {strides = array<i32>} : memref<64x32xf32, #tpu.memory_space<vmem>>, vector<8x32xf32>,
    %c5_i32 = arith.constant 5 : i32
    %c8_i32_47 = arith.constant 8 : i32
    %180 = arith.muli %c5_i32, %c8_i32_47 : i32
    %181 = tpu.assume_multiple %180, 8 : i32
    %182 = arith.index_cast %181 : i32 to index
    %c0_48 = arith.constant 0 : index
    %183 = vector.load %arg12[%182, %c0_48] : memref<64x128xf32, #tpu.memory_space<vmem>>, vector<8x128xf32>
    %184 = arith.truncf %177 : vector<8x32xf32> to vector<8x32xbf16>
    %cst_49 = arith.constant dense<0.000000e+00> : vector<8x128xf32>
    %185 = tpu.matmul %184, %7, %cst_49 {dimension_numbers = #tpu.dot_dimension_numbers<[1], [0], [0], [1], [0, 0, 1, 1], [], []>} : vector<8x32xbf16>, vector<32x128xbf16>, vector<8x128xf32> -> vector<8x128xf32>
    %186 = arith.addf %183, %185 : vector<8x128xf32>
    %187 = vector.extract_strided_slice %186 {offsets = [0, 0], sizes = [8, 32], strides = [1, 1]} : vector<8x128xf32> to vector<8x32xf32>
    %188 = arith.negf %187 : vector<8x32xf32>
    %189 = math.exp %188 : vector<8x32xf32>
    %cst_50 = arith.constant 1.000000e+00 : f32
    %190 = vector.broadcast %cst_50 : f32 to vector<8x32xf32>
    %191 = arith.addf %190, %189 : vector<8x32xf32>
    %192 = arith.divf %190, %191 : vector<8x32xf32>
    %193 = vector.extract_strided_slice %186 {offsets = [0, 32], sizes = [8, 32], strides = [1, 1]} : vector<8x128xf32> to vector<8x32xf32>
    %194 = arith.negf %193 : vector<8x32xf32>
    %195 = math.exp %194 : vector<8x32xf32>
    %cst_51 = arith.constant 1.000000e+00 : f32
    %196 = vector.broadcast %cst_51 : f32 to vector<8x32xf32>
    %197 = arith.addf %196, %195 : vector<8x32xf32>
    %198 = arith.divf %196, %197 : vector<8x32xf32>
    %199 = vector.extract_strided_slice %186 {offsets = [0, 64], sizes = [8, 32], strides = [1, 1]} : vector<8x128xf32> to vector<8x32xf32>
    %200 = math.tanh %199 : vector<8x32xf32>
    %201 = vector.extract_strided_slice %186 {offsets = [0, 96], sizes = [8, 32], strides = [1, 1]} : vector<8x128xf32> to vector<8x32xf32>
    %202 = arith.negf %201 : vector<8x32xf32>
    %203 = math.exp %202 : vector<8x32xf32>
    %cst_52 = arith.constant 1.000000e+00 : f32
    %204 = vector.broadcast %cst_52 : f32 to vector<8x32xf32>
    %205 = arith.addf %204, %203 : vector<8x32xf32>
    %206 = arith.divf %204, %205 : vector<8x32xf32>
    %207 = arith.mulf %198, %175 : vector<8x32xf32>
    %208 = arith.mulf %192, %200 : vector<8x32xf32>
    %209 = arith.addf %207, %208 : vector<8x32xf32>
    %210 = math.tanh %209 : vector<8x32xf32>
    %211 = arith.mulf %206, %210 : vector<8x32xf32>
    %212 = arith.index_cast %181 : i32 to index
    %c0_53 = arith.constant 0 : index
    %213 = vector.load %arg13[%212, %c0_53] : memref<64x32xf32, #tpu.memory_space<vmem>>, vector<8x32xf32>
    tpu.vector_store %arg13[%212, %c0_53], %211 {strides = array<i32>} : memref<64x32xf32, #tpu.memory_space<vmem>>, vector<8x32xf32>,
    %c6_i32 = arith.constant 6 : i32
    %c8_i32_54 = arith.constant 8 : i32
    %214 = arith.muli %c6_i32, %c8_i32_54 : i32
    %215 = tpu.assume_multiple %214, 8 : i32
    %216 = arith.index_cast %215 : i32 to index
    %c0_55 = arith.constant 0 : index
    %217 = vector.load %arg12[%216, %c0_55] : memref<64x128xf32, #tpu.memory_space<vmem>>, vector<8x128xf32>
    %218 = arith.truncf %211 : vector<8x32xf32> to vector<8x32xbf16>
    %cst_56 = arith.constant dense<0.000000e+00> : vector<8x128xf32>
    %219 = tpu.matmul %218, %7, %cst_56 {dimension_numbers = #tpu.dot_dimension_numbers<[1], [0], [0], [1], [0, 0, 1, 1], [], []>} : vector<8x32xbf16>, vector<32x128xbf16>, vector<8x128xf32> -> vector<8x128xf32>
    %220 = arith.addf %217, %219 : vector<8x128xf32>
    %221 = vector.extract_strided_slice %220 {offsets = [0, 0], sizes = [8, 32], strides = [1, 1]} : vector<8x128xf32> to vector<8x32xf32>
    %222 = arith.negf %221 : vector<8x32xf32>
    %223 = math.exp %222 : vector<8x32xf32>
    %cst_57 = arith.constant 1.000000e+00 : f32
    %224 = vector.broadcast %cst_57 : f32 to vector<8x32xf32>
    %225 = arith.addf %224, %223 : vector<8x32xf32>
    %226 = arith.divf %224, %225 : vector<8x32xf32>
    %227 = vector.extract_strided_slice %220 {offsets = [0, 32], sizes = [8, 32], strides = [1, 1]} : vector<8x128xf32> to vector<8x32xf32>
    %228 = arith.negf %227 : vector<8x32xf32>
    %229 = math.exp %228 : vector<8x32xf32>
    %cst_58 = arith.constant 1.000000e+00 : f32
    %230 = vector.broadcast %cst_58 : f32 to vector<8x32xf32>
    %231 = arith.addf %230, %229 : vector<8x32xf32>
    %232 = arith.divf %230, %231 : vector<8x32xf32>
    %233 = vector.extract_strided_slice %220 {offsets = [0, 64], sizes = [8, 32], strides = [1, 1]} : vector<8x128xf32> to vector<8x32xf32>
    %234 = math.tanh %233 : vector<8x32xf32>
    %235 = vector.extract_strided_slice %220 {offsets = [0, 96], sizes = [8, 32], strides = [1, 1]} : vector<8x128xf32> to vector<8x32xf32>
    %236 = arith.negf %235 : vector<8x32xf32>
    %237 = math.exp %236 : vector<8x32xf32>
    %cst_59 = arith.constant 1.000000e+00 : f32
    %238 = vector.broadcast %cst_59 : f32 to vector<8x32xf32>
    %239 = arith.addf %238, %237 : vector<8x32xf32>
    %240 = arith.divf %238, %239 : vector<8x32xf32>
    %241 = arith.mulf %232, %209 : vector<8x32xf32>
    %242 = arith.mulf %226, %234 : vector<8x32xf32>
    %243 = arith.addf %241, %242 : vector<8x32xf32>
    %244 = math.tanh %243 : vector<8x32xf32>
    %245 = arith.mulf %240, %244 : vector<8x32xf32>
    %246 = arith.index_cast %215 : i32 to index
    %c0_60 = arith.constant 0 : index
    %247 = vector.load %arg13[%246, %c0_60] : memref<64x32xf32, #tpu.memory_space<vmem>>, vector<8x32xf32>
    tpu.vector_store %arg13[%246, %c0_60], %245 {strides = array<i32>} : memref<64x32xf32, #tpu.memory_space<vmem>>, vector<8x32xf32>,
    %c7_i32 = arith.constant 7 : i32
    %c8_i32_61 = arith.constant 8 : i32
    %248 = arith.muli %c7_i32, %c8_i32_61 : i32
    %249 = tpu.assume_multiple %248, 8 : i32
    %250 = arith.index_cast %249 : i32 to index
    %c0_62 = arith.constant 0 : index
    %251 = vector.load %arg12[%250, %c0_62] : memref<64x128xf32, #tpu.memory_space<vmem>>, vector<8x128xf32>
    %252 = arith.truncf %245 : vector<8x32xf32> to vector<8x32xbf16>
    %cst_63 = arith.constant dense<0.000000e+00> : vector<8x128xf32>
    %253 = tpu.matmul %252, %7, %cst_63 {dimension_numbers = #tpu.dot_dimension_numbers<[1], [0], [0], [1], [0, 0, 1, 1], [], []>} : vector<8x32xbf16>, vector<32x128xbf16>, vector<8x128xf32> -> vector<8x128xf32>
    %254 = arith.addf %251, %253 : vector<8x128xf32>
    %255 = vector.extract_strided_slice %254 {offsets = [0, 0], sizes = [8, 32], strides = [1, 1]} : vector<8x128xf32> to vector<8x32xf32>
    %256 = arith.negf %255 : vector<8x32xf32>
    %257 = math.exp %256 : vector<8x32xf32>
    %cst_64 = arith.constant 1.000000e+00 : f32
    %258 = vector.broadcast %cst_64 : f32 to vector<8x32xf32>
    %259 = arith.addf %258, %257 : vector<8x32xf32>
    %260 = arith.divf %258, %259 : vector<8x32xf32>
    %261 = vector.extract_strided_slice %254 {offsets = [0, 32], sizes = [8, 32], strides = [1, 1]} : vector<8x128xf32> to vector<8x32xf32>
    %262 = arith.negf %261 : vector<8x32xf32>
    %263 = math.exp %262 : vector<8x32xf32>
    %cst_65 = arith.constant 1.000000e+00 : f32
    %264 = vector.broadcast %cst_65 : f32 to vector<8x32xf32>
    %265 = arith.addf %264, %263 : vector<8x32xf32>
    %266 = arith.divf %264, %265 : vector<8x32xf32>
    %267 = vector.extract_strided_slice %254 {offsets = [0, 64], sizes = [8, 32], strides = [1, 1]} : vector<8x128xf32> to vector<8x32xf32>
    %268 = math.tanh %267 : vector<8x32xf32>
    %269 = vector.extract_strided_slice %254 {offsets = [0, 96], sizes = [8, 32], strides = [1, 1]} : vector<8x128xf32> to vector<8x32xf32>
    %270 = arith.negf %269 : vector<8x32xf32>
    %271 = math.exp %270 : vector<8x32xf32>
    %cst_66 = arith.constant 1.000000e+00 : f32
    %272 = vector.broadcast %cst_66 : f32 to vector<8x32xf32>
    %273 = arith.addf %272, %271 : vector<8x32xf32>
    %274 = arith.divf %272, %273 : vector<8x32xf32>
    %275 = arith.mulf %266, %243 : vector<8x32xf32>
    %276 = arith.mulf %260, %268 : vector<8x32xf32>
    %277 = arith.addf %275, %276 : vector<8x32xf32>
    %278 = math.tanh %277 : vector<8x32xf32>
    %279 = arith.mulf %274, %278 : vector<8x32xf32>
    %280 = arith.index_cast %249 : i32 to index
    %c0_67 = arith.constant 0 : index
    %281 = vector.load %arg13[%280, %c0_67] : memref<64x32xf32, #tpu.memory_space<vmem>>, vector<8x32xf32>
    tpu.vector_store %arg13[%280, %c0_67], %279 {strides = array<i32>} : memref<64x32xf32, #tpu.memory_space<vmem>>, vector<8x32xf32>,
    %c8_i32_68 = arith.constant 8 : i32
    %c0_69 = arith.constant 0 : index
    %c0_70 = arith.constant 0 : index
    %282 = vector.load %arg10[%c0_69, %c0_70] : memref<8x32xf32, #tpu.memory_space<vmem>>, vector<8x32xf32>
    tpu.vector_store %arg10[%c0_69, %c0_70], %279 {strides = array<i32>} : memref<8x32xf32, #tpu.memory_space<vmem>>, vector<8x32xf32>,
    %c0_71 = arith.constant 0 : index
    %c0_72 = arith.constant 0 : index
    %283 = vector.load %arg11[%c0_71, %c0_72] : memref<8x32xf32, #tpu.memory_space<vmem>>, vector<8x32xf32>
    tpu.vector_store %arg11[%c0_71, %c0_72], %277 {strides = array<i32>} : memref<8x32xf32, #tpu.memory_space<vmem>>, vector<8x32xf32>,
    %c0_73 = arith.constant 0 : index
    %c0_74 = arith.constant 0 : index
    %284 = vector.load %arg13[%c0_73, %c0_74] : memref<64x32xf32, #tpu.memory_space<vmem>>, vector<64x32xf32>
    %285 = arith.truncf %284 : vector<64x32xf32> to vector<64x32xbf16>
    %c0_75 = arith.constant 0 : index
    %c0_76 = arith.constant 0 : index
    %286 = vector.load %arg5[%c0_75, %c0_76] : memref<32x128xbf16, #tpu.memory_space<vmem>>, vector<32x128xbf16>
    %cst_77 = arith.constant dense<0.000000e+00> : vector<64x128xf32>
    %287 = tpu.matmul %285, %286, %cst_77 {dimension_numbers = #tpu.dot_dimension_numbers<[1], [0], [0], [1], [0, 0, 1, 1], [], []>} : vector<64x32xbf16>, vector<32x128xbf16>, vector<64x128xf32> -> vector<64x128xf32>
    %c0_78 = arith.constant 0 : index
    %c0_79 = arith.constant 0 : index
    %288 = vector.load %arg6[%c0_78, %c0_79] : memref<1x128xf32, #tpu.memory_space<vmem>>, vector<1x128xf32>
    %289 = vector.broadcast %288 : vector<1x128xf32> to vector<64x128xf32>
    %290 = arith.addf %287, %289 : vector<64x128xf32>
    %c0_80 = arith.constant 0 : index
    %c0_81 = arith.constant 0 : index
    %291 = vector.load %arg9[%c0_80, %c0_81] : memref<64x128xf32, #tpu.memory_space<vmem>>, vector<64x128xf32>
    tpu.vector_store %arg9[%c0_80, %c0_81], %290 {strides = array<i32>} : memref<64x128xf32, #tpu.memory_space<vmem>>, vector<64x128xf32>,
    return
  }
  func.func @transform_0(%arg0: i32) -> (i32, i32) {
    %c0_i32 = arith.constant 0 : i32
    %c0_i32_0 = arith.constant 0 : i32
    %c0_i32_1 = arith.constant 0 : i32
    return %c0_i32, %c0_i32_0 : i32, i32
  }
  func.func @transform_1(%arg0: i32) -> (i32, i32) {
    %c0_i32 = arith.constant 0 : i32
    %c0_i32_0 = arith.constant 0 : i32
    %c0_i32_1 = arith.constant 0 : i32
    return %c0_i32, %c0_i32_0 : i32, i32
  }
  func.func @transform_2(%arg0: i32) -> (i32, i32) {
    %c0_i32 = arith.constant 0 : i32
    %c0_i32_0 = arith.constant 0 : i32
    %c0_i32_1 = arith.constant 0 : i32
    return %c0_i32, %c0_i32_0 : i32, i32
  }
  func.func @transform_3(%arg0: i32) -> (i32, i32) {
    %c0_i32 = arith.constant 0 : i32
    %c0_i32_0 = arith.constant 0 : i32
    %c0_i32_1 = arith.constant 0 : i32
    return %c0_i32, %c0_i32_0 : i32, i32
  }
  func.func @transform_4(%arg0: i32) -> (i32, i32) {
    %c0_i32 = arith.constant 0 : i32
    %c0_i32_0 = arith.constant 0 : i32
    %c0_i32_1 = arith.constant 0 : i32
    return %c0_i32, %c0_i32_0 : i32, i32
  }
  func.func @transform_5(%arg0: i32) -> (i32, i32) {
    %c0_i32 = arith.constant 0 : i32
    %c0_i32_0 = arith.constant 0 : i32
    %c0_i32_1 = arith.constant 0 : i32
    return %c0_i32, %c0_i32_0 : i32, i32
  }
  func.func @transform_6(%arg0: i32) -> (i32, i32) {
    %c0_i32 = arith.constant 0 : i32
    %c0_i32_0 = arith.constant 0 : i32
    %c0_i32_1 = arith.constant 0 : i32
    return %c0_i32, %c0_i32_0 : i32, i32
  }
  func.func @transform_7(%arg0: i32) -> (i32, i32) {
    %c0_i32 = arith.constant 0 : i32
    %c0_i32_0 = arith.constant 0 : i32
    %c0_i32_1 = arith.constant 0 : i32
    return %c0_i32, %c0_i32_0 : i32, i32
  }
  func.func @transform_8(%arg0: i32) -> (i32, i32) {
    %c0_i32 = arith.constant 0 : i32
    %c0_i32_0 = arith.constant 0 : i32
    %c0_i32_1 = arith.constant 0 : i32
    return %c0_i32, %c0_i32_0 : i32, i32
  }
  func.func @transform_9(%arg0: i32) -> (i32, i32) {
    %c0_i32 = arith.constant 0 : i32
    %c0_i32_0 = arith.constant 0 : i32
    %c0_i32_1 = arith.constant 0 : i32
    return %c0_i32, %c0_i32_0 : i32, i32
  }
  func.func @transform_10(%arg0: i32) -> (i32, i32) {
    %c0_i32 = arith.constant 0 : i32
    %c0_i32_0 = arith.constant 0 : i32
    %c0_i32_1 = arith.constant 0 : i32
    return %c0_i32, %c0_i32_0 : i32, i32
  }
}

</mosaic_0001>

<bundles_post_ra>
// kernel: char_decoder_forward.1
= control target key start
LH: loop header
LB: loop body
LE: loop exit
PB: predicated region body
PF: predicated region fallthrough
CT: control target
= control target key end

     0   :  { %v1232_v1 = vmov 0.0   ;;  %vm1233_vm0 = vmmov 0   ;;  %vm96_vm1 = vcmask 408576   ;;  %vm109_vm2 = vcmask 1040384   ;;  %s1234_s30 = smov 64   ;;  %s1543_s1 = inlined_call_operand.vmem [shape: bf16[50,128], index: 1, kind: input, shape index: {}]   ;;  %s1544_s2 = inlined_call_operand.vmem [shape: bf16[32,128], index: 2, kind: input, shape index: {}]   ;;  %s1545_s0 = inlined_call_operand.vmem [shape: bf16[64,50], index: 0, kind: input, shape index: {}]   ;;  %s1546_s6 = inlined_call_operand.vmem [shape: f32[8,32], index: 6, kind: input, shape index: {}]   ;;  %s1547_s3 = inlined_call_operand.vmem [shape: f32[1,128], index: 3, kind: input, shape index: {}]   ;;  %s1548_s7 = inlined_call_operand.vmem [shape: f32[8,32], index: 7, kind: input, shape index: {}]   ;;  %s1549_s4 = inlined_call_operand.vmem [shape: bf16[32,128], index: 4, kind: input, shape index: {}]   ;;  %s1550_s10 = inlined_call_operand.vmem [shape: f32[8,32], index: 10, kind: output, shape index: {2}]   ;;  %s1551_s9 = inlined_call_operand.vmem [shape: f32[8,32], index: 9, kind: output, shape index: {1}]   ;;  %s1552_s5 = inlined_call_operand.vmem [shape: f32[1,128], index: 5, kind: input, shape index: {}]   ;;  %s1553_s8 = inlined_call_operand.vmem [shape: f32[64,128], index: 8, kind: output, shape index: {0}]  }
   0x1   :  { %v1156_v0 = vld [vmem:[%s1543_s1] sm:$0xff]   ;;  %1074 = vmatprep.subr.bf16.mxu1 %v1232_v1  ;;  %1078 = vmatprep.mubr.msk.bf16.mxu1 %vm1233_vm0, %v1232_v1  ;;  %v1157_v2 = vld [vmem:[%s1543_s1 + $0x8] sm:$0xff]   ;;  %v1158_v4 = vld [vmem:[%s1543_s1 + $0x10] sm:$0xff]   ;;  %vm206_vm3 = vcmask 261120  }
   0x2   :  { %1058 = vmatprep.subr.bf16.mxu0 %v1156_v0  ;;  %v1304_v3 = vld [vmem:[%s1544_s2] sm:$0xff]   ;;  %v1312_v5 = vld [vmem:[%s1544_s2 + $0x8] sm:$0xff]   ;;  %v1160_v7 = vld [vmem:[%s1543_s1 + $0x18] ss:$0 sps:$4 sm:$0x11]  }
   0x3   :  { %1059 = vmatpush3.bf16.msra.mxu0 %v1156_v0  ;;  %1075 = vmatpush3.bf16.msra.mxu1 %v1304_v3  ;;  %v1162_v6 = vld [vmem:[%s1545_s0] sm:$0xff]   ;;  %v111_v10 = vsel %vm109_vm2, %v1160_v7, 0  ;;  %v1163_v11 = vld [vmem:[%s1545_s0 + $0x8] sm:$0xff]  }
   0x4   :  { %1060 = vmatprep.subr.bf16.mxu0 %v1157_v2  ;;  %1076 = vmatprep.subr.bf16.mxu1 %v1232_v1  ;;  %v190_v8 = vld [vmem:[%s1546_s6] sm:$0xff] }
   0x5   :  { %1066 = vmatprep.mubr.msk.bf16.mxu0 %vm96_vm1, %v1162_v6  ;;  %v193_v9 = vpack.c.bf16 %v190_v8, %v190_v8  ;;  %v1347_v16 = vld [vmem:[%s1547_s3] ss:$0 sm:$0xff]  ;;  %s1235_s3 = smov 32  }
   0x6   :  { %v191_v24 = vld [vmem:[%s1548_s7] sm:$0xff] }
   0x7   :  { %1061 = vmatpush3.bf16.msra.mxu0 %v1157_v2  ;;  %1077 = vmatpush3.bf16.msra.mxu1 %v1312_v5 }
   0x8   :  { %1062 = vmatprep.subr.bf16.mxu0 %v1158_v4  ;;  %1082 = vmatprep.subr.bf16.mxu1 %v1232_v1 }
   0xa   :  { %1079 = vmatmul.mubr.msk.bf16.vlgmr.msra.gmra.mrb[0].mxu1 %vm206_vm3, %v193_v9 }
   0xb   :  { %1063 = vmatpush3.bf16.msra.mxu0 %v1158_v4  ;;  %1083 = vmatpush3.bf16.msra.mxu1 %v1304_v3 }
   0xc   :  { %1150 = vmatprep.subr.msk.bf16.mxu0 %vm109_vm2, %v1160_v7  ;;  %1086 = vmatprep.mubr.msk.bf16.mxu1 %vm1233_vm0, %v1232_v1 }
   0xd   :  { %1084 = vmatprep.subr.bf16.mxu1 %v1232_v1 }
   0xf   :  { %1065 = vmatpush3.bf16.msra.mxu0 %v111_v10  ;;  %1085 = vmatpush3.bf16.msra.mxu1 %v1312_v5 }
  0x10   :  { %1098 = vmatprep.subr.bf16.mxu0 %v1232_v1  ;;  %1090 = vmatprep.subr.bf16.mxu1 %v1232_v1 }
  0x12   :  { %1067 = vmatmul.mubr.msk.bf16.vlgmr.msra.gmra.mrb[0].mxu0 %vm96_vm1, %v1163_v11 }
  0x13   :  { %1099 = vmatpush3.bf16.msra.mxu0 %v1304_v3 }
  0x14   :  { %1100 = vmatprep.subr.bf16.mxu0 %v1232_v1 }
  0x17   :  { %1101 = vmatpush3.bf16.msra.mxu0 %v1312_v5 }
  0x18   :  { %1114 = vmatprep.subr.bf16.mxu0 %v1232_v1 }
  0xdd   :  { %v244_v12 = vpop.f32.mrb[0].mxu1 }
  0xde   :  { %v1080_v13 = vpop.f32.mrb[1].mxu1 }
  0xdf   :  { %v247_v14 = vpop.f32.mrb[2].mxu1 }
  0xe0   :  { %v1081_v15 = vpop.f32.mrb[3].mxu1 }
  0xe5   :  { %v1349_v17 = vpop.f32.mrb[0].mxu0 }
  0xe6   :  { %v147_v18 = vpop.f32.mrb[1].mxu0  ;;  %v156_v61 = vadd.f32 %v1349_v17, %v1347_v16  ;;  %v1164_v17 = vld [vmem:[%s1545_s0 + $0x10] sm:$0xff]  }
  0xe7   :  { %v148_v19 = vadd.f32 %v1347_v16, %v147_v18  ;;  %v1352_v20 = vpop.f32.mrb[2].mxu0  ;;  %v1165_v18 = vld [vmem:[%s1545_s0 + $0x18] sm:$0xff]   ;;  %1070 = vmatprep.mubr.msk.bf16.mxu0 %vm96_vm1, %v1164_v17  ;;  %s1236_s0 = smov 96  }
  0xe8   :  { %v150_v21 = vpop.f32.mrb[3].mxu0  ;;  %1071 = vmatmul.mubr.msk.bf16.gmra.mrb[4].mxu0 %vm96_vm1, %v1165_v18 }
  0xe9   :  { %v250_v22 = vadd.f32 %v244_v12, %v148_v19  ;;  %v151_v40 = vadd.f32 %v1347_v16, %v150_v21  ;;  %1102 = vmatprep.mubr.msk.bf16.mxu0 %vm1233_vm0, %v1232_v1 }
  0xeb   :  { %1168 = vtanh.f32 %v250_v22  ;;  %v998_v25 = vmul.f32 -1.442695, %v250_v22 }
  0xed   :  { %1170 = vpow2.f32 %v998_v25 }
  0xf5   :  { %v1169_v23 = vpop.eup %1168 }
  0xf6   :  { %264 = vrot.lane.b32.xlu0 %v1169_v23, %s1234_s30 }
  0xf7   :  { %v1171_v26 = vpop.eup %1170 }
  0xf8   :  { %v254_v27 = vadd.f32 1.0, %v1171_v26 }
  0xfa   :  { %259 = vrot.lane.b32.xlu0 %v191_v24, %s1235_s3  ;;  %1172 = vrcp.f32 %v254_v27 }
 0x104   :  { %v1173_v28 = vpop.eup %1172 }
 0x168   :  { %v265_v29 = vpop.permute.xlu0 %264 }
 0x169   :  { %v267_v30 = vmul.f32 %v1173_v28, %v265_v29  ;;  %v159_v29 = vadd.f32 %v1352_v20, %v1347_v16 }
 0x16b   :  { %269 = vrot.lane.b32.xlu1 %v267_v30, %s1235_s3 }
 0x16c   :  { %v260_v31 = vpop.permute.xlu0 %259 }
 0x16d   :  { %v262_v32 = vmul.f32 %v1173_v28, %v260_v31 }
 0x1bb   :  { %v1409_v24 = vpop.f32.mrb[4].mxu0 }
 0x1bc   :  { %v163_v25 = vpop.f32.mrb[5].mxu0 }
 0x1bd   :  { %v1411_v26 = vpop.f32.mrb[6].mxu0 }
 0x1be   :  { %v1413_v27 = vpop.f32.mrb[7].mxu0 }
 0x1dd   :  { %v270_v33 = vpop.permute.xlu1 %269 }
 0x1de   :  { %v272_v34 = vadd.f32 %v270_v33, %v262_v32 }
 0x1e0   :  { %1174 = vtanh.f32 %v272_v34 }
 0x1ea   :  { %v1175_v35 = vpop.eup %1174 }
 0x1eb   :  { %275 = vrot.lane.b32.xlu1 %v1175_v35, %s1234_s30 }
 0x25d   :  { %v276_v36 = vpop.permute.xlu1 %275 }
 0x25e   :  { %v1361_v37 = vmul.f32 %v1173_v28, %v276_v36 }
 0x260   :  { %v286_v38 = vpack.c.bf16 %v1361_v37, %v1361_v37 }
 0x262   :  { %288 = vrot.lane.b32.xlu0 %v286_v38, %s1235_s3 }
 0x2d4   :  { %v289_v39 = vpop.permute.xlu0 %288 }
 0x2d5   :  { %1087 = vmatmul.mubr.msk.bf16.vlgmr.msra.gmra.mrb[4].mxu1 %vm206_vm3, %v289_v39 }
 0x2d6   :  { %1091 = vmatpush3.bf16.msra.mxu1 %v1304_v3  ;;  %1094 = vmatprep.mubr.msk.bf16.mxu1 %vm1233_vm0, %v1232_v1 }
 0x2d7   :  { %1092 = vmatprep.subr.bf16.mxu1 %v1232_v1 }
 0x2da   :  { %1093 = vmatpush3.bf16.msra.mxu1 %v1312_v5 }
 0x2db   :  { %1106 = vmatprep.subr.bf16.mxu1 %v1232_v1 }
 0x3a8   :  { %v327_v41 = vpop.f32.mrb[4].mxu1 }
 0x3a9   :  { %v333_v42 = vadd.f32 %v327_v41, %v151_v40  ;;  %v1088_v43 = vpop.f32.mrb[5].mxu1 }
 0x3aa   :  { %v330_v44 = vpop.f32.mrb[6].mxu1 }
 0x3ab   :  { %1176 = vtanh.f32 %v333_v42  ;;  %v1089_v45 = vpop.f32.mrb[7].mxu1  ;;  %v1000_v47 = vmul.f32 -1.442695, %v333_v42 }
 0x3ad   :  { %1178 = vpow2.f32 %v1000_v47 }
 0x3b5   :  { %v1177_v46 = vpop.eup %1176 }
 0x3b6   :  { %343 = vrot.lane.b32.xlu1 %v1177_v46, %s1234_s30 }
 0x3b7   :  { %v1179_v48 = vpop.eup %1178 }
 0x3b8   :  { %v337_v49 = vadd.f32 1.0, %v1179_v48 }
 0x3ba   :  { %1180 = vrcp.f32 %v337_v49 }
 0x3c4   :  { %v1181_v50 = vpop.eup %1180 }
 0x3c5   :  { %v341_v53 = vmul.f32 %v1181_v50, %v272_v34 }
 0x428   :  { %v344_v51 = vpop.permute.xlu1 %343 }
 0x429   :  { %v346_v52 = vmul.f32 %v1181_v50, %v344_v51 }
 0x42b   :  { %348 = vrot.lane.b32.xlu0 %v346_v52, %s1235_s3 }
 0x49d   :  { %v349_v54 = vpop.permute.xlu0 %348 }
 0x49e   :  { %v351_v55 = vadd.f32 %v349_v54, %v341_v53 }
 0x4a0   :  { %1182 = vtanh.f32 %v351_v55 }
 0x4aa   :  { %v1183_v56 = vpop.eup %1182 }
 0x4ab   :  { %354 = vrot.lane.b32.xlu1 %v1183_v56, %s1234_s30 }
 0x51d   :  { %v355_v57 = vpop.permute.xlu1 %354 }
 0x51e   :  { %v1377_v58 = vmul.f32 %v1181_v50, %v355_v57  ;;  %v164_v50 = vadd.f32 %v1347_v16, %v163_v25 }
 0x520   :  { %v366_v59 = vpack.c.bf16 %v1377_v58, %v1377_v58 }
 0x522   :  { %368 = vrot.lane.b32.xlu0 %v366_v59, %s1235_s3 }
 0x594   :  { %v369_v60 = vpop.permute.xlu0 %368 }
 0x595   :  { %1095 = vmatmul.mubr.msk.bf16.vlgmr.msra.gmra.mrb[8].mxu1 %vm206_vm3, %v369_v60 }
 0x596   :  { %1107 = vmatpush3.bf16.msra.mxu1 %v1304_v3  ;;  %1110 = vmatprep.mubr.msk.bf16.mxu1 %vm1233_vm0, %v1232_v1 }
 0x597   :  { %1108 = vmatprep.subr.bf16.mxu1 %v1232_v1 }
 0x59a   :  { %1109 = vmatpush3.bf16.msra.mxu1 %v1312_v5 }
 0x59b   :  { %1122 = vmatprep.subr.bf16.mxu1 %v1232_v1 }
 0x668   :  { %v407_v62 = vpop.f32.mrb[8].mxu1 }
 0x669   :  { %v413_v63 = vadd.f32 %v407_v62, %v156_v61  ;;  %v1096_v0 = vpop.f32.mrb[9].mxu1 }
 0x66a   :  { %v410_v2 = vpop.f32.mrb[10].mxu1 }
 0x66b   :  { %1184 = vtanh.f32 %v413_v63  ;;  %v1097_v4 = vpop.f32.mrb[11].mxu1  ;;  %v1002_v7 = vmul.f32 -1.442695, %v413_v63 }
 0x66d   :  { %1186 = vpow2.f32 %v1002_v7 }
 0x675   :  { %v1185_v6 = vpop.eup %1184 }
 0x676   :  { %423 = vrot.lane.b32.xlu1 %v1185_v6, %s1234_s30 }
 0x677   :  { %v1187_v8 = vpop.eup %1186 }
 0x678   :  { %v417_v9 = vadd.f32 1.0, %v1187_v8 }
 0x67a   :  { %1188 = vrcp.f32 %v417_v9 }
 0x684   :  { %v1189_v10 = vpop.eup %1188 }
 0x685   :  { %v421_v13 = vmul.f32 %v1189_v10, %v351_v55 }
 0x6e8   :  { %v424_v11 = vpop.permute.xlu1 %423 }
 0x6e9   :  { %v426_v12 = vmul.f32 %v1189_v10, %v424_v11  ;;  %v167_v11 = vadd.f32 %v1347_v16, %v1413_v27 }
 0x6eb   :  { %428 = vrot.lane.b32.xlu0 %v426_v12, %s1235_s3 }
 0x75d   :  { %v429_v14 = vpop.permute.xlu0 %428 }
 0x75e   :  { %v431_v15 = vadd.f32 %v429_v14, %v421_v13 }
 0x760   :  { %1190 = vtanh.f32 %v431_v15 }
 0x76a   :  { %v1191_v19 = vpop.eup %1190 }
 0x76b   :  { %434 = vrot.lane.b32.xlu1 %v1191_v19, %s1234_s30 }
 0x7dd   :  { %v435_v21 = vpop.permute.xlu1 %434 }
 0x7de   :  { %v1404_v22 = vmul.f32 %v1189_v10, %v435_v21 }
 0x7e0   :  { %v446_v23 = vpack.c.bf16 %v1404_v22, %v1404_v22 }
 0x7e2   :  { %448 = vrot.lane.b32.xlu0 %v446_v23, %s1235_s3 }
 0x854   :  { %v449_v28 = vpop.permute.xlu0 %448 }
 0x855   :  { %1103 = vmatmul.mubr.msk.bf16.vlgmr.msra.gmra.mrb[8].mxu0 %vm206_vm3, %v449_v28 }
 0x856   :  { %1115 = vmatpush3.bf16.msra.mxu0 %v1304_v3  ;;  %1118 = vmatprep.mubr.msk.bf16.mxu0 %vm1233_vm0, %v1232_v1 }
 0x857   :  { %1116 = vmatprep.subr.bf16.mxu0 %v1232_v1 }
 0x85a   :  { %1117 = vmatpush3.bf16.msra.mxu0 %v1312_v5 }
 0x85b   :  { %1130 = vmatprep.subr.bf16.mxu0 %v1232_v1 }
 0x928   :  { %v487_v30 = vpop.f32.mrb[8].mxu0 }
 0x929   :  { %v493_v31 = vadd.f32 %v487_v30, %v159_v29  ;;  %v1104_v32 = vpop.f32.mrb[9].mxu0 }
 0x92a   :  { %v490_v33 = vpop.f32.mrb[10].mxu0 }
 0x92b   :  { %1192 = vtanh.f32 %v493_v31  ;;  %v1105_v34 = vpop.f32.mrb[11].mxu0  ;;  %v1004_v36 = vmul.f32 -1.442695, %v493_v31 }
 0x92c   :  { %v172_v34 = vadd.f32 %v1409_v24, %v1347_v16 }
 0x92d   :  { %1194 = vpow2.f32 %v1004_v36 }
 0x935   :  { %v1193_v35 = vpop.eup %1192 }
 0x936   :  { %503 = vrot.lane.b32.xlu1 %v1193_v35, %s1234_s30 }
 0x937   :  { %v1195_v38 = vpop.eup %1194 }
 0x938   :  { %v497_v39 = vadd.f32 1.0, %v1195_v38 }
 0x93a   :  { %1196 = vrcp.f32 %v497_v39 }
 0x944   :  { %v1197_v40 = vpop.eup %1196 }
 0x945   :  { %v501_v20 = vmul.f32 %v1197_v40, %v431_v15 }
 0x9a8   :  { %v504_v41 = vpop.permute.xlu1 %503 }
 0x9a9   :  { %v506_v42 = vmul.f32 %v1197_v40, %v504_v41 }
 0x9ab   :  { %508 = vrot.lane.b32.xlu0 %v506_v42, %s1235_s3 }
 0xa1d   :  { %v509_v43 = vpop.permute.xlu0 %508 }
 0xa1e   :  { %v511_v44 = vadd.f32 %v509_v43, %v501_v20 }
 0xa20   :  { %1198 = vtanh.f32 %v511_v44 }
 0xa2a   :  { %v1199_v45 = vpop.eup %1198 }
 0xa2b   :  { %514 = vrot.lane.b32.xlu1 %v1199_v45, %s1234_s30 }
 0xa9d   :  { %v515_v46 = vpop.permute.xlu1 %514 }
 0xa9e   :  { %v1427_v47 = vmul.f32 %v1197_v40, %v515_v46 }
 0xaa0   :  { %v526_v48 = vpack.c.bf16 %v1427_v47, %v1427_v47 }
 0xaa2   :  { %528 = vrot.lane.b32.xlu0 %v526_v48, %s1235_s3 }
 0xb14   :  { %v529_v49 = vpop.permute.xlu0 %528 }
 0xb15   :  { %1111 = vmatmul.mubr.msk.bf16.vlgmr.msra.gmra.mrb[12].mxu1 %vm206_vm3, %v529_v49 }
 0xb16   :  { %1123 = vmatpush3.bf16.msra.mxu1 %v1304_v3  ;;  %1126 = vmatprep.mubr.msk.bf16.mxu1 %vm1233_vm0, %v1232_v1 }
 0xb17   :  { %1124 = vmatprep.subr.bf16.mxu1 %v1232_v1 }
 0xb1a   :  { %1125 = vmatpush3.bf16.msra.mxu1 %v1312_v5 }
 0xbe8   :  { %v567_v51 = vpop.f32.mrb[12].mxu1 }
 0xbe9   :  { %v573_v52 = vadd.f32 %v567_v51, %v164_v50  ;;  %v1112_v53 = vpop.f32.mrb[13].mxu1 }
 0xbea   :  { %v570_v54 = vpop.f32.mrb[14].mxu1 }
 0xbeb   :  { %1200 = vtanh.f32 %v573_v52  ;;  %v1113_v55 = vpop.f32.mrb[15].mxu1  ;;  %v1006_v57 = vmul.f32 -1.442695, %v573_v52 }
 0xbec   :  { %v175_v55 = vadd.f32 %v1411_v26, %v1347_v16 }
 0xbed   :  { %1202 = vpow2.f32 %v1006_v57 }
 0xbf5   :  { %v1201_v56 = vpop.eup %1200 }
 0xbf6   :  { %583 = vrot.lane.b32.xlu1 %v1201_v56, %s1234_s30 }
 0xbf7   :  { %v1203_v59 = vpop.eup %1202 }
 0xbf8   :  { %v577_v60 = vadd.f32 1.0, %v1203_v59 }
 0xbfa   :  { %1204 = vrcp.f32 %v577_v60 }
 0xc04   :  { %v1205_v61 = vpop.eup %1204 }
 0xc05   :  { %v581_v0 = vmul.f32 %v1205_v61, %v511_v44 }
 0xc68   :  { %v584_v62 = vpop.permute.xlu1 %583 }
 0xc69   :  { %v586_v63 = vmul.f32 %v1205_v61, %v584_v62 }
 0xc6b   :  { %588 = vrot.lane.b32.xlu0 %v586_v63, %s1235_s3 }
 0xcdd   :  { %v589_v2 = vpop.permute.xlu0 %588 }
 0xcde   :  { %v591_v4 = vadd.f32 %v589_v2, %v581_v0 }
 0xce0   :  { %1206 = vtanh.f32 %v591_v4 }
 0xcea   :  { %v1207_v6 = vpop.eup %1206 }
 0xceb   :  { %594 = vrot.lane.b32.xlu1 %v1207_v6, %s1234_s30 }
 0xd5d   :  { %v595_v7 = vpop.permute.xlu1 %594 }
 0xd5e   :  { %v1442_v8 = vmul.f32 %v1205_v61, %v595_v7 }
 0xd60   :  { %v606_v9 = vpack.c.bf16 %v1442_v8, %v1442_v8 }
 0xd62   :  { %608 = vrot.lane.b32.xlu0 %v606_v9, %s1235_s3 }
 0xdd4   :  { %v609_v10 = vpop.permute.xlu0 %608 }
 0xdd5   :  { %1119 = vmatmul.mubr.msk.bf16.vlgmr.msra.gmra.mrb[12].mxu0 %vm206_vm3, %v609_v10 }
 0xdd6   :  { %1131 = vmatpush3.bf16.msra.mxu0 %v1304_v3  ;;  %1134 = vmatprep.mubr.msk.bf16.mxu0 %vm1233_vm0, %v1232_v1 }
 0xdd7   :  { %1132 = vmatprep.subr.bf16.mxu0 %v1232_v1 }
 0xdda   :  { %1133 = vmatpush3.bf16.msra.mxu0 %v1312_v5 }
 0xea8   :  { %v647_v12 = vpop.f32.mrb[12].mxu0 }
 0xea9   :  { %v653_v13 = vadd.f32 %v647_v12, %v167_v11  ;;  %v1120_v14 = vpop.f32.mrb[13].mxu0  ;;  %v1167_v12 = vld [vmem:[%s1549_s4 + $0x8] sm:$0xff]  }
 0xeaa   :  { %v650_v15 = vpop.f32.mrb[14].mxu0 }
 0xeab   :  { %1208 = vtanh.f32 %v653_v13  ;;  %v1121_v17 = vpop.f32.mrb[15].mxu0  ;;  %v1008_v3 = vmul.f32 -1.442695, %v653_v13 }
 0xead   :  { %1210 = vpow2.f32 %v1008_v3 }
 0xeb5   :  { %v1209_v18 = vpop.eup %1208 }
 0xeb6   :  { %663 = vrot.lane.b32.xlu1 %v1209_v18, %s1234_s30 }
 0xeb7   :  { %v1211_v19 = vpop.eup %1210 }
 0xeb8   :  { %v657_v21 = vadd.f32 1.0, %v1211_v19 }
 0xeba   :  { %1212 = vrcp.f32 %v657_v21 }
 0xec4   :  { %v1213_v1 = vpop.eup %1212 }
 0xec5   :  { %v661_v25 = vmul.f32 %v1213_v1, %v591_v4 }
 0xf28   :  { %v664_v23 = vpop.permute.xlu1 %663 }
 0xf29   :  { %v666_v5 = vmul.f32 %v1213_v1, %v664_v23 }
 0xf2b   :  { %668 = vrot.lane.b32.xlu0 %v666_v5, %s1235_s3 }
 0xf9d   :  { %v669_v27 = vpop.permute.xlu0 %668 }
 0xf9e   :  { %v671_v28 = vadd.f32 %v669_v27, %v661_v25 }
 0xfa0   :  { %1214 = vtanh.f32 %v671_v28 }
 0xfaa   :  { %v1215_v29 = vpop.eup %1214 }
 0xfab   :  { %674 = vrot.lane.b32.xlu1 %v1215_v29, %s1234_s30 }
0x101d   :  { %v675_v30 = vpop.permute.xlu1 %674 }
0x101e   :  { %v1458_v31 = vmul.f32 %v1213_v1, %v675_v30 }
0x1020   :  { %v686_v32 = vpack.c.bf16 %v1458_v31, %v1458_v31 }
0x1022   :  { %688 = vrot.lane.b32.xlu0 %v686_v32, %s1235_s3 }
0x1094   :  { %v689_v33 = vpop.permute.xlu0 %688 }
0x1095   :  { %1127 = vmatmul.mubr.msk.bf16.vlgmr.msra.gmra.mrb[16].mxu1 %vm206_vm3, %v689_v33  ;;  %v1013_v33 = vld [vmem:[%s1552_s5] ss:$0 sm:$0xff] }
0x1168   :  { %v727_v35 = vpop.f32.mrb[16].mxu1 }
0x1169   :  { %v733_v36 = vadd.f32 %v727_v35, %v172_v34  ;;  %v1128_v38 = vpop.f32.mrb[17].mxu1 }
0x116a   :  { %v730_v39 = vpop.f32.mrb[18].mxu1 }
0x116b   :  { %1216 = vtanh.f32 %v733_v36  ;;  %v1129_v40 = vpop.f32.mrb[19].mxu1  ;;  %v1010_v42 = vmul.f32 -1.442695, %v733_v36 }
0x116d   :  { %1218 = vpow2.f32 %v1010_v42 }
0x1175   :  { %v1217_v41 = vpop.eup %1216 }
0x1176   :  { %743 = vrot.lane.b32.xlu1 %v1217_v41, %s1234_s30 }
0x1177   :  { %v1219_v20 = vpop.eup %1218 }
0x1178   :  { %v737_v43 = vadd.f32 1.0, %v1219_v20 }
0x117a   :  { %1220 = vrcp.f32 %v737_v43 }
0x1184   :  { %v1221_v44 = vpop.eup %1220 }
0x1185   :  { %v741_v24 = vmul.f32 %v1221_v44, %v671_v28 }
0x11e8   :  { %v744_v45 = vpop.permute.xlu1 %743 }
0x11e9   :  { %v746_v46 = vmul.f32 %v1221_v44, %v744_v45 }
0x11eb   :  { %748 = vrot.lane.b32.xlu0 %v746_v46, %s1235_s3 }
0x125d   :  { %v749_v48 = vpop.permute.xlu0 %748 }
0x125e   :  { %v751_v49 = vadd.f32 %v749_v48, %v741_v24 }
0x1260   :  { %1222 = vtanh.f32 %v751_v49 }
0x126a   :  { %v1223_v50 = vpop.eup %1222 }
0x126b   :  { %754 = vrot.lane.b32.xlu1 %v1223_v50, %s1234_s30 }
0x12dd   :  { %v755_v51 = vpop.permute.xlu1 %754 }
0x12de   :  { %v757_v52 = vmul.f32 %v1221_v44, %v755_v51 }
0x12e0   :  { %v766_v53 = vpack.c.bf16 %v757_v52, %v757_v52 }
0x12e2   :  { %768 = vrot.lane.b32.xlu0 %v766_v53, %s1235_s3 }
0x1354   :  { %v769_v54 = vpop.permute.xlu0 %768 }
0x1355   :  { %1135 = vmatmul.mubr.msk.bf16.vlgmr.msra.gmra.mrb[16].mxu0 %vm206_vm3, %v769_v54 }
0x1428   :  { %v807_v56 = vpop.f32.mrb[16].mxu0 }
0x1429   :  { %v813_v57 = vadd.f32 %v807_v56, %v175_v55  ;;  %v1136_v59 = vpop.f32.mrb[17].mxu0 }
0x142a   :  { %v810_v60 = vpop.f32.mrb[18].mxu0 }
0x142b   :  { %1224 = vtanh.f32 %v813_v57  ;;  %v1137_v61 = vpop.f32.mrb[19].mxu0  ;;  %v1012_v63 = vmul.f32 -1.442695, %v813_v57 }
0x142d   :  { %1226 = vpow2.f32 %v1012_v63 }
0x1435   :  { %v1225_v62 = vpop.eup %1224 }
0x1436   :  { %823 = vrot.lane.b32.xlu1 %v1225_v62, %s1234_s30 }
0x1437   :  { %v1227_v0 = vpop.eup %1226 }
0x1438   :  { %v817_v2 = vadd.f32 1.0, %v1227_v0 }
0x143a   :  { %1228 = vrcp.f32 %v817_v2 }
0x1444   :  { %v1229_v4 = vpop.eup %1228 }
0x1445   :  { %v821_v16 = vmul.f32 %v1229_v4, %v751_v49 }
0x14a8   :  { %v824_v6 = vpop.permute.xlu1 %823 }
0x14a9   :  { %v826_v7 = vmul.f32 %v1229_v4, %v824_v6 }
0x14ab   :  { %828 = vrot.lane.b32.xlu0 %v826_v7, %s1235_s3 }
0x14af   :  { %280 = vrot.lane.b32.xlu0 %v1361_v37, %s1235_s3  ;;  %v1166_v37 = vld [vmem:[%s1549_s4] sm:$0xff]  }
0x14b0   :  { %1138 = vmatprep.subr.bf16.mxu1 %v1166_v37 }
0x14b1   :  { %1139 = vmatpush3.bf16.msra.mxu1 %v1166_v37 }
0x14b2   :  { %1140 = vmatprep.subr.bf16.mxu1 %v1167_v12 }
0x14b3   :  { %439 = vrot.lane.b32.xlu0 %v1404_v22, %s1235_s3 }
0x14b5   :  { %1141 = vmatpush3.bf16.msra.mxu1 %v1167_v12 }
0x14b7   :  { %599 = vrot.lane.b32.xlu0 %v1442_v8, %s1235_s3 }
0x14bb   :  { %759 = vrot.lane.b32.xlu0 %v757_v52, %s1235_s3 }
0x151d   :  { %v829_v26 = vpop.permute.xlu0 %828 }
0x151e   :  { %v831_v9 = vadd.f32 %v829_v26, %v821_v16 }
0x1520   :  { %1230 = vtanh.f32 %v831_v9  ;;  %846 = vrot.lane.b32.xlu0 %v831_v9, %s1236_s0 }
0x1521   :  { %v281_v10 = vpop.permute.xlu0 %280 }
0x1522   :  { %283 = vst.msk [vmem:[#allocation3] sm:$0xff] %vm206_vm3, %v281_v10 }
0x1525   :  { %v440_v11 = vpop.permute.xlu0 %439 }
0x1526   :  { %443 = vst.msk [vmem:[#allocation3 + $0x10] sm:$0xff] %vm206_vm3, %v440_v11 }
0x1529   :  { %v600_v22 = vpop.permute.xlu0 %599  ;;  %v850_v3 = vld [vmem:[#allocation3] sm:$0xff] }
0x152a   :  { %v1231_v8 = vpop.eup %1230  ;;  %603 = vst.msk [vmem:[#allocation3 + $0x20] sm:$0xff] %vm206_vm3, %v600_v22 }
0x152b   :  { %834 = vrot.lane.b32.xlu1 %v1231_v8, %s1234_s30 }
0x152d   :  { %v760_v13 = vpop.permute.xlu0 %759  ;;  %v852_v1 = vld [vmem:[#allocation3 + $0x10] sm:$0xff] }
0x152e   :  { %763 = vst.msk [vmem:[#allocation3 + $0x30] sm:$0xff] %vm206_vm3, %v760_v13 }
0x152f   :  { %359 = vrot.lane.b32.xlu1 %v1377_v58, %s1235_s3 }
0x1531   :  { %v854_v25 = vld [vmem:[#allocation3 + $0x20] sm:$0xff] }
0x1533   :  { %519 = vrot.lane.b32.xlu1 %v1427_v47, %s1235_s3 }
0x1535   :  { %v856_v30 = vld [vmem:[#allocation3 + $0x30] sm:$0xff] }
0x1537   :  { %679 = vrot.lane.b32.xlu1 %v1458_v31, %s1235_s3 }
0x1592   :  { %v847_v14 = vpop.permute.xlu0 %846 }
0x1593   :  { %849 = vst.msk [vmem:[%s1550_s10] sm:$0xff] %vm206_vm3, %v847_v14 }
0x159d   :  { %v835_v15 = vpop.permute.xlu1 %834 }
0x159e   :  { %v837_v17 = vmul.f32 %v1229_v4, %v835_v15 }
0x15a0   :  { %839 = vrot.lane.b32.xlu1 %v837_v17, %s1235_s3 }
0x15a1   :  { %v360_v18 = vpop.permute.xlu1 %359 }
0x15a2   :  { %363 = vst.msk [vmem:[#allocation3 + $0x8] sm:$0xff] %vm206_vm3, %v360_v18 }
0x15a5   :  { %v520_v58 = vpop.permute.xlu1 %519 }
0x15a6   :  { %523 = vst.msk [vmem:[#allocation3 + $0x18] sm:$0xff] %vm206_vm3, %v520_v58 }
0x15a9   :  { %v680_v47 = vpop.permute.xlu1 %679  ;;  %v851_v19 = vld [vmem:[#allocation3 + $0x8] sm:$0xff] }
0x15aa   :  { %683 = vst.msk [vmem:[#allocation3 + $0x28] sm:$0xff] %vm206_vm3, %v680_v47  ;;  %v858_v21 = vpack.c.bf16 %v851_v19, %v850_v3 }
0x15ac   :  { %1142 = vmatprep.mubr.msk.bf16.mxu1 %vm206_vm3, %v858_v21 }
0x15ad   :  { %v853_v23 = vld [vmem:[#allocation3 + $0x18] sm:$0xff] }
0x15ae   :  { %v859_v5 = vpack.c.bf16 %v853_v23, %v852_v1 }
0x15b0   :  { %1143 = vmatmul.mubr.msk.bf16.vlgmr.msra.gmra.mrb[20].mxu1 %vm206_vm3, %v859_v5 }
0x15b1   :  { %v855_v27 = vld [vmem:[#allocation3 + $0x28] sm:$0xff] }
0x15b2   :  { %v860_v28 = vpack.c.bf16 %v855_v27, %v854_v25 }
0x15b4   :  { %1146 = vmatprep.mubr.msk.bf16.mxu1 %vm206_vm3, %v860_v28 }
0x1612   :  { %v840_v29 = vpop.permute.xlu1 %839 }
0x1613   :  { %843 = vst.msk [vmem:[#allocation3 + $0x38] sm:$0xff] %vm206_vm3, %v840_v29  ;;  %844 = vst.msk [vmem:[%s1551_s9] sm:$0xff] %vm206_vm3, %v840_v29 }
0x161a   :  { %v857_v31 = vld [vmem:[#allocation3 + $0x38] sm:$0xff] }
0x161b   :  { %v861_v32 = vpack.c.bf16 %v857_v31, %v856_v30 }
0x161d   :  { %1147 = vmatmul.mubr.msk.bf16.gmra.mrb[24].mxu1 %vm206_vm3, %v861_v32 }
0x1683   :  { %v1144_v34 = vpop.f32.mrb[20].mxu1 }
0x1684   :  { %v940_v35 = vadd.f32 %v1144_v34, %v1013_v33  ;;  %v931_v36 = vpop.f32.mrb[21].mxu1 }
0x1685   :  { %v932_v38 = vadd.f32 %v1013_v33, %v931_v36  ;;  %v1145_v39 = vpop.f32.mrb[22].mxu1 }
0x1686   :  { %964 = vst [vmem:[%s1553_s8 + $0x10] sm:$0xff] %v940_v35  ;;  %v943_v40 = vadd.f32 %v1145_v39, %v1013_v33  ;;  %v934_v41 = vpop.f32.mrb[23].mxu1 }
0x1687   :  { %962 = vst [vmem:[%s1553_s8] sm:$0xff] %v932_v38  ;;  %v935_v42 = vadd.f32 %v1013_v33, %v934_v41 }
0x1688   :  { %965 = vst [vmem:[%s1553_s8 + $0x18] sm:$0xff] %v943_v40 }
0x1689   :  { %963 = vst [vmem:[%s1553_s8 + $0x8] sm:$0xff] %v935_v42 }
0x16f0   :  { %v1148_v20 = vpop.f32.mrb[24].mxu1 }
0x16f1   :  { %v956_v43 = vadd.f32 %v1148_v20, %v1013_v33  ;;  %v947_v44 = vpop.f32.mrb[25].mxu1 }
0x16f2   :  { %v948_v45 = vadd.f32 %v1013_v33, %v947_v44  ;;  %v1149_v46 = vpop.f32.mrb[26].mxu1 }
0x16f3   :  { %968 = vst [vmem:[%s1553_s8 + $0x30] sm:$0xff] %v956_v43  ;;  %v959_v24 = vadd.f32 %v1149_v46, %v1013_v33  ;;  %v950_v48 = vpop.f32.mrb[27].mxu1 }
0x16f4   :  { %966 = vst [vmem:[%s1553_s8 + $0x20] sm:$0xff] %v948_v45  ;;  %v951_v49 = vadd.f32 %v1013_v33, %v950_v48 }
0x16f5   :  { %969 = vst [vmem:[%s1553_s8 + $0x38] sm:$0xff] %v959_v24 }
0x16f6   :  { %967 = vst [vmem:[%s1553_s8 + $0x28] sm:$0xff] %v951_v49 }

</bundles_post_ra>
